<compile_context>
chip_gen: v7x
topology: tpu7x:2x2x1
jax: 0.10.0
libtpu: 0.0.40
codegen_flags: <defaults>
</compile_context>

<pallas_src>
import jax
import jax.numpy as jnp
from jax import lax
from jax.experimental import pallas as pl
from jax.experimental.pallas import tpu as pltpu
from typing import NamedTuple


class ClassificationOutput(NamedTuple):
    logits: jnp.ndarray
    probas: jnp.ndarray
    labels: jnp.ndarray
    category: jnp.ndarray = None  # not produced by the PyTorch forward either


class ModelOutput(NamedTuple):
    representation: jnp.ndarray


def _round_up(n: int, m: int) -> int:
    return ((n + m - 1) // m) * m


def _coral_head_kernel(x_ref, w_ref, b_ref, logits_t_ref, probas_t_ref, labels_t_ref):
    # x_ref:        [TB, D]   representation tile
    # w_ref:        [1, D]    coral weight (nn.Linear(D, 1, bias=False)) -- resident
    # b_ref:        [K-1, 1]  coral_bias as a column                     -- resident
    # logits_t_ref: [K-1, TB] transposed: batch on the lane axis (dense stores)
    # probas_t_ref: [K-1, TB]
    # labels_t_ref: [1, TB]
    # Single-output matvec on the (otherwise idle) MXU; result is already
    # lane-dense: s_t[0, b] = sum_d w[0, d] * x[b, d].
    s_t = lax.dot_general(
        w_ref[...], x_ref[...],
        dimension_numbers=(((1,), (1,)), ((), ())),
        preferred_element_type=jnp.float32,
    )                                                    # [1, TB]
    logits_t = s_t + b_ref[...]                          # [K-1,1] + [1,TB] -> [K-1,TB]
    logits_t_ref[...] = logits_t
    probas_t_ref[...] = jax.nn.sigmoid(logits_t)
    # proba_to_label: count(sigmoid(l) > 0.5) == count(l > 0)  (identical, incl. l==0),
    # computed off the pre-sigmoid logits so it does not wait on the EUP sigmoid.
    labels_t_ref[...] = jnp.sum((logits_t > 0.0).astype(jnp.float32),
                                axis=0, keepdims=True)   # [1, TB]


def _choose_tb(B: int, D: int) -> int:
    """Batch tile: ~8 MiB x-buffer, multiple of 128 (lane axis of outputs)."""
    target_bytes = 8 << 20                      # per x buffer (Pallas double-buffers)
    tb = target_bytes // (4 * D)
    tb = max(512, min(tb, 32768))
    tb = max(128, (tb // 128) * 128)
    if B <= tb:
        if B > 1024:
            # Split into >=2 tiles so a 2-TensorCore chip (v7x) shards the batch axis.
            tb = max(128, _round_up(-(-B // 2), 128))
        else:
            # Single block whose dims equal the full array dims (exact, no raggedness).
            tb = B
    return tb


def coral_head(representation, coral_weight, coral_bias):
    """representation: [B, D] f32; coral_weight: [1, D] f32; coral_bias: [K-1] f32."""
    B, D = representation.shape
    K1 = coral_bias.shape[0]
    w2d = coral_weight.reshape(1, D).astype(jnp.float32)
    bias_col = coral_bias.reshape(K1, 1).astype(jnp.float32)

    TB = _choose_tb(B, D)
    grid = (pl.cdiv(B, TB),)

    # Real footprint: x tile double-buffered + each output tile double-buffered
    # + resident params; 2x headroom, capped well under v7x's 64 MiB physical VMEM
    # (the 8 MiB-per-buffer budget keeps this ~<40 MiB on every generation).
    footprint = 4 * (2 * TB * D + 4 * TB * K1 + 2 * TB + D + K1)
    vmem_limit = int(min(96 << 20, max(16 << 20, 2 * footprint)))

    cost = pl.CostEstimate(
        flops=2 * B * D + 4 * B * K1,
        transcendentals=B * K1,
        bytes_accessed=4 * (B * D + D + K1 + 2 * B * K1 + B),
    )

    logits_t, probas_t, labels_t = pl.pallas_call(
        _coral_head_kernel,
        out_shape=(
            jax.ShapeDtypeStruct((K1, B), jnp.float32),
            jax.ShapeDtypeStruct((K1, B), jnp.float32),
            jax.ShapeDtypeStruct((1, B), jnp.float32),
        ),
        grid=grid,
        in_specs=[
            pl.BlockSpec((TB, D), lambda i: (i, 0)),    # x: tiled over batch
            pl.BlockSpec((1, D), lambda i: (0, 0)),     # weight: resident
            pl.BlockSpec((K1, 1), lambda i: (0, 0)),    # bias column: resident
        ],
        out_specs=(
            pl.BlockSpec((K1, TB), lambda i: (0, i)),   # logits^T: lane-dense stores
            pl.BlockSpec((K1, TB), lambda i: (0, i)),   # probas^T
            pl.BlockSpec((1, TB), lambda i: (0, i)),    # labels (row vector)
        ),
        compiler_params=pltpu.CompilerParams(
            dimension_semantics=("parallel",),          # shard batch tiles across TCs
            vmem_limit_bytes=vmem_limit,
        ),
        cost_estimate=cost,
    )(representation, w2d, bias_col)

    # Cheap fix-up transposes on the tiny [K-1, B] outputs (layout plumbing only).
    logits = logits_t.T
    probas = probas_t.T
    labels = labels_t.reshape(B)                         # already .float() in-kernel
    return ClassificationOutput(logits=logits, probas=probas, labels=labels)


if __name__ == "__main__":
    # Small shapes consistent with the module: latent_dim=32, num_classes=5, batch=8.
    B, D, NUM_CLASSES = 8, 32, 5
    K1 = NUM_CLASSES - 1

    key = jax.random.PRNGKey(0)
    kx, kw = jax.random.split(key)
    representation = jax.random.normal(kx, (B, D), dtype=jnp.float32)

    # Deterministic parameter init (CoralLayer): weight ~ small random,
    # coral_bias preinit = arange(K-1, 0, -1) / (K-1)  (coral_pytorch default).
    coral_weight = (jax.random.normal(kw, (1, D), dtype=jnp.float32)
                    * (1.0 / jnp.sqrt(D)))
    coral_bias = jnp.arange(K1, 0, -1, dtype=jnp.float32) / K1

    out = coral_head(representation, coral_weight, coral_bias)
    jax.block_until_ready(out.logits)
    jax.block_until_ready(out.probas)
    jax.block_until_ready(out.labels)

    # Reference check in plain JAX.
    ref_logits = representation @ coral_weight.T + coral_bias[None, :]
    ref_probas = jax.nn.sigmoid(ref_logits)
    ref_labels = jnp.sum(ref_probas > 0.5, axis=1).astype(jnp.float32)
    assert out.logits.shape == (B, K1) and out.probas.shape == (B, K1)
    assert out.labels.shape == (B,)
    assert jnp.allclose(out.logits, ref_logits, atol=1e-5)
    assert jnp.allclose(out.probas, ref_probas, atol=1e-5)
    assert jnp.allclose(out.labels, ref_labels)

    print("KERNEL_OK")
</pallas_src>

<mosaic_0001>
module attributes {stable_mosaic.version = 11 : i64} {
  func.func @_coral_head_kernel(%arg0: i32, %arg1: memref<8x32xf32, #tpu.memory_space<vmem>>, %arg2: memref<1x32xf32, #tpu.memory_space<vmem>>, %arg3: memref<4x1xf32, #tpu.memory_space<vmem>>, %arg4: memref<4x8xf32, #tpu.memory_space<vmem>>, %arg5: memref<4x8xf32, #tpu.memory_space<vmem>>, %arg6: memref<1x8xf32, #tpu.memory_space<vmem>>) attributes {dimension_semantics = [#tpu.dimension_semantics<parallel>], iteration_bounds = array<i64: 1>, scalar_prefetch = 0 : i64, scratch_operands = 0 : i64, tpu.core_type = #tpu.core_type<tc>, window_params = [{transform_indices = @transform_0, window_bounds = array<i64: 8, 32>}, {pipeline_mode = #tpu.pipeline_mode<synchronous>, transform_indices = @transform_1, window_bounds = array<i64: 1, 32>}, {pipeline_mode = #tpu.pipeline_mode<synchronous>, transform_indices = @transform_2, window_bounds = array<i64: 4, 1>}, {transform_indices = @transform_3, window_bounds = array<i64: 4, 8>}, {transform_indices = @transform_4, window_bounds = array<i64: 4, 8>}, {transform_indices = @transform_5, window_bounds = array<i64: 1, 8>}]} {
    %c0 = arith.constant 0 : index
    %c0_0 = arith.constant 0 : index
    %0 = vector.load %arg2[%c0, %c0_0] : memref<1x32xf32, #tpu.memory_space<vmem>>, vector<1x32xf32>
    %c0_1 = arith.constant 0 : index
    %c0_2 = arith.constant 0 : index
    %1 = vector.load %arg1[%c0_1, %c0_2] : memref<8x32xf32, #tpu.memory_space<vmem>>, vector<8x32xf32>
    %cst = arith.constant dense<0.000000e+00> : vector<1x8xf32>
    %2 = tpu.matmul %0, %1, %cst {dimension_numbers = #tpu.dot_dimension_numbers<[1], [1], [0], [0], [0, 0, 1, 0], [], []>} : vector<1x32xf32>, vector<8x32xf32>, vector<1x8xf32> -> vector<1x8xf32>
    %c0_3 = arith.constant 0 : index
    %c0_4 = arith.constant 0 : index
    %3 = vector.load %arg3[%c0_3, %c0_4] : memref<4x1xf32, #tpu.memory_space<vmem>>, vector<4x1xf32>
    %4 = vector.broadcast %2 : vector<1x8xf32> to vector<4x8xf32>
    %5 = vector.broadcast %3 : vector<4x1xf32> to vector<4x8xf32>
    %6 = arith.addf %4, %5 : vector<4x8xf32>
    %c0_5 = arith.constant 0 : index
    %c0_6 = arith.constant 0 : index
    %7 = vector.load %arg4[%c0_5, %c0_6] : memref<4x8xf32, #tpu.memory_space<vmem>>, vector<4x8xf32>
    tpu.vector_store %arg4[%c0_5, %c0_6], %6 {strides = array<i32>} : memref<4x8xf32, #tpu.memory_space<vmem>>, vector<4x8xf32>,
    %8 = arith.negf %6 : vector<4x8xf32>
    %9 = math.exp %8 : vector<4x8xf32>
    %cst_7 = arith.constant 1.000000e+00 : f32
    %10 = vector.broadcast %cst_7 : f32 to vector<4x8xf32>
    %11 = arith.addf %10, %9 : vector<4x8xf32>
    %12 = arith.divf %10, %11 : vector<4x8xf32>
    %c0_8 = arith.constant 0 : index
    %c0_9 = arith.constant 0 : index
    %13 = vector.load %arg5[%c0_8, %c0_9] : memref<4x8xf32, #tpu.memory_space<vmem>>, vector<4x8xf32>
    tpu.vector_store %arg5[%c0_8, %c0_9], %12 {strides = array<i32>} : memref<4x8xf32, #tpu.memory_space<vmem>>, vector<4x8xf32>,
    %cst_10 = arith.constant 0.000000e+00 : f32
    %14 = vector.broadcast %cst_10 : f32 to vector<4x8xf32>
    %15 = arith.cmpf ogt, %6, %14 : vector<4x8xf32>
    %16 = arith.extui %15 : vector<4x8xi1> to vector<4x8xi32>
    %17 = arith.sitofp %16 : vector<4x8xi32> to vector<4x8xf32>
    %cst_11 = arith.constant dense<0.000000e+00> : vector<8xf32>
    %18 = vector.multi_reduction <add>, %17, %cst_11 [0] : vector<4x8xf32> to vector<8xf32>
    %19 = vector.shape_cast %18 : vector<8xf32> to vector<1x8xf32>
    %c0_12 = arith.constant 0 : index
    %c0_13 = arith.constant 0 : index
    %20 = vector.load %arg6[%c0_12, %c0_13] : memref<1x8xf32, #tpu.memory_space<vmem>>, vector<1x8xf32>
    tpu.vector_store %arg6[%c0_12, %c0_13], %19 {strides = array<i32>} : memref<1x8xf32, #tpu.memory_space<vmem>>, vector<1x8xf32>,
    return
  }
  func.func @transform_0(%arg0: i32) -> (i32, i32) {
    %c0_i32 = arith.constant 0 : i32
    %c0_i32_0 = arith.constant 0 : i32
    return %arg0, %c0_i32 : i32, i32
  }
  func.func @transform_1(%arg0: i32) -> (i32, i32) {
    %c0_i32 = arith.constant 0 : i32
    %c0_i32_0 = arith.constant 0 : i32
    %c0_i32_1 = arith.constant 0 : i32
    return %c0_i32, %c0_i32_0 : i32, i32
  }
  func.func @transform_2(%arg0: i32) -> (i32, i32) {
    %c0_i32 = arith.constant 0 : i32
    %c0_i32_0 = arith.constant 0 : i32
    %c0_i32_1 = arith.constant 0 : i32
    return %c0_i32, %c0_i32_0 : i32, i32
  }
  func.func @transform_3(%arg0: i32) -> (i32, i32) {
    %c0_i32 = arith.constant 0 : i32
    %c0_i32_0 = arith.constant 0 : i32
    return %c0_i32, %arg0 : i32, i32
  }
  func.func @transform_4(%arg0: i32) -> (i32, i32) {
    %c0_i32 = arith.constant 0 : i32
    %c0_i32_0 = arith.constant 0 : i32
    return %c0_i32, %arg0 : i32, i32
  }
  func.func @transform_5(%arg0: i32) -> (i32, i32) {
    %c0_i32 = arith.constant 0 : i32
    %c0_i32_0 = arith.constant 0 : i32
    return %c0_i32, %arg0 : i32, i32
  }
}

</mosaic_0001>

<bundles_post_ra>
// kernel: tpu_custom_call.1
= control target key start
LH: loop header
LB: loop body
LE: loop exit
PB: predicated region body
PF: predicated region fallthrough
CT: control target
= control target key end

     0   :  { %11 = vsyncpa [#allocation3], 0  ;;  %s395_s0 = inlined_call_operand.hbm [shape: f32[8,32], index: 0, kind: input, shape index: {}]   ;;  %s396_s1 = inlined_call_operand.vmem [shape: f32[1,32], index: 1, kind: input, shape index: {}]   ;;  %s397_s2 = inlined_call_operand.vmem [shape: f32[4,1], index: 2, kind: input, shape index: {}]   ;;  %s398_s3 = inlined_call_operand.hbm [shape: f32[4,8], index: 3, kind: output, shape index: {0}]   ;;  %s399_s4 = inlined_call_operand.hbm [shape: f32[4,8], index: 4, kind: output, shape index: {1}]   ;;  %s400_s5 = inlined_call_operand.hbm [shape: f32[1,8], index: 5, kind: output, shape index: {2}]  }
   0x1   :  { %12 = vsyncpa [#allocation4], 0 }
   0x2   :  { %13 = vsyncpa [#allocation7], 0  ;;  %s301_s18 = smov [#allocation2]   ;;  %s207_s22 = scalar_lea.hbm %s395_s0, 128 }
   0x3   :  { %s20_s19 = sshll.u32 %s301_s18, 4  ;;  %p208_p0 = scmp.ne.s32.totalorder %s395_s0, %s207_s22  ;;  %s21_s19 = int_to_ptr.vmem [resolvable:$true] %s20_s19 }
   0x4   :  { %p211_p1 = scmp.lt.u32.totalorder %s207_s22, %s395_s0 }
   0x6   :  { %p213_p2 = pnand %p211_p1, %p208_p0 }
   0x8   :  { %216 = shalt.err (!%p213_p2)
}
   0x9   :  { %s217_s27 = scalar_lea.vmem %s21_s19, 128  ;;  %p222_p4 = scmp.lt.s32.totalorder %s21_s19, %s21_s19 }
   0xa   :  { %p218_p3 = scmp.ne.s32.totalorder %s21_s19, %s217_s27  ;;  %p223_p5 = scmp.lt.s32.totalorder %s217_s27, %s217_s27 }
   0xc   :  { %p224_p6 = por %p223_p5, %p222_p4 }
   0xe   :  { %p225_p7 = pnand %p224_p6, %p218_p3 }
  0x10   :  { %228 = shalt.err (!%p225_p7)
}
  0x11   :  { %23 = dma.hbm_to_vmem [thread:$0]  %s395_s0, 128, %s21_s19, [#allocation3]  }
  0x12   :  { %295 = dma.done.wait [#allocation3], 128  }
  0x13   :  { %296 = vsyncadd [#allocation3], 4294967168  ;;  %v302_v0 = vmov 0.0   ;;  %vm303_vm0 = vmmov 0   ;;  %v304_v1 = vmov 0   ;;  %vm33_vm1 = vcmask 261120  }
  0x14   :  { %190 = vmatprep.subr.mxu0 %v302_v0  ;;  %192 = vmatprep.mubr.msk.f32.mxu0 %vm303_vm0, %v302_v0  ;;  %v32_v2 = vld [vmem:[#allocation2] sm:$0xff]  ;;  %v111_v5 = vlaneseq  ;;  %s305_s0 = smov [#allocation5]   ;;  %vm121_vm2 = vcmask 60416  }
  0x15   :  { %202 = vset.pattern.permute.xlu0 %v304_v1  ;;  %v110_v3 = vld [vmem:[%s397_s2] sm:$0xf]  ;;  %191 = vmatpush3.xpose.msk.msra.mxu0 %vm33_vm1, %v32_v2  ;;  %s148_s9 = sshll.u32 %s305_s0, 4  ;;  %s149_s9 = int_to_ptr.vmem [resolvable:$true] %s148_s9 }
  0x16   :  { %v31_v4 = vld [vmem:[%s396_s1] sm:$0x1]  ;;  %117 = vperm.xlu0 %202, %v110_v3   ;;  %v112_v6 = vshrl.u32 %v111_v5, 7  ;;  %s229_s1 = scalar_lea.vmem %s149_s9, 64  ;;  %p234_p9 = scmp.lt.s32.totalorder %s149_s9, %s149_s9 }
  0x17   :  { %p230_p8 = scmp.ne.s32.totalorder %s149_s9, %s229_s1  ;;  %p235_p10 = scmp.lt.s32.totalorder %s229_s1, %s229_s1 }
  0x18   :  { %193 = vmatmul.mubr.msk.f32.vlgmr.msra.gmra.mrb[0].mxu0 %vm33_vm1, %v31_v4  ;;  %v113_v7 = vsub.s32 0, %v112_v6 }
  0x19   :  { %p236_p11 = por %p235_p10, %p234_p9 }
  0x1b   :  { %p237_p12 = pnand %p236_p11, %p230_p8 }
  0x95   :  { %v118_v9 = vpop.permute.xlu0 %117 }
  0xeb   :  { %v106_v8 = vpop.f32.mrb[0].mxu0 }
  0xec   :  { %v114_v10 = vrot.slane %v106_v8, %v113_v7  ;;  %v194_v11 = vpop.f32.mrb[1].mxu0 }
  0xee   :  { %v120_v12 = vadd.f32 %v118_v9, %v114_v10 }
  0xf0   :  { %v186_v13 = vmul.f32 -1.442695, %v120_v12  ;;  %vm130_vm3 = vcmp.gt.f32.partialorder %v120_v12, 0.0  ;;  %122 = vst.msk [vmem:[#allocation5] sm:$0xf] %vm121_vm2, %v120_v12 }
  0xf1   :  { %v187_v14 = vsel %vm130_vm3, 1.0, %v302_v0 }
  0xf2   :  { %240 = shalt.err (!%p237_p12)
}
  0xf3   :  { %s241_s11 = scalar_lea.hbm %s398_s3, 64 }
  0xf4   :  { %p242_p13 = scmp.ne.s32.totalorder %s398_s3, %s241_s11  ;;  %p245_p0 = scmp.lt.u32.totalorder %s241_s11, %s398_s3 }
  0xf6   :  { %p247_p1 = pnand %p245_p0, %p242_p13 }
  0xf8   :  { %250 = shalt.err (!%p247_p1)
}
  0xf9   :  { %151 = dma.vmem_to_hbm [thread:$0]  %s149_s9, 64, %s398_s3, [#allocation4]   ;;  %203 = vpow2.f32 %v186_v13  ;;  %v133_v15 = vsel %vm121_vm2, %v187_v14, 0.0  ;;  %vm140_vm4 = vcmask 57344  }
  0xfa   :  { %v134_v16 = vrot.slane %v133_v15, 4  ;;  %s306_s18 = smov [#allocation6]   ;;  %s307_s20 = smov [#allocation8]  }
  0xfb   :  { %s158_s19 = sshll.u32 %s306_s18, 4  ;;  %s168_s21 = sshll.u32 %s307_s20, 4  ;;  %s159_s19 = int_to_ptr.vmem [resolvable:$true] %s158_s19  ;;  %s169_s21 = int_to_ptr.vmem [resolvable:$true] %s168_s21 }
  0xfc   :  { %v135_v17 = vadd.f32 %v134_v16, %v133_v15  ;;  %s251_s3 = scalar_lea.vmem %s159_s19, 64  ;;  %p256_p3 = scmp.lt.s32.totalorder %s159_s19, %s159_s19 }
  0xfd   :  { %p252_p2 = scmp.ne.s32.totalorder %s159_s19, %s251_s3  ;;  %p257_p4 = scmp.lt.s32.totalorder %s251_s3, %s251_s3 }
  0xfe   :  { %v136_v18 = vrot.slane %v135_v17, 2 }
  0xff   :  { %p258_p5 = por %p257_p4, %p256_p3 }
 0x100   :  { %v137_v19 = vadd.f32 %v136_v18, %v135_v17 }
 0x101   :  { %p259_p6 = pnand %p258_p5, %p252_p2 }
 0x102   :  { %v138_v20 = vrot.slane %v137_v19, 1 }
 0x103   :  { %v204_v21 = vpop.eup %203 }
 0x104   :  { %v126_v22 = vadd.f32 1.0, %v204_v21  ;;  %v139_v23 = vadd.f32 %v138_v20, %v137_v19 }
 0x106   :  { %205 = vrcp.f32 %v126_v22  ;;  %141 = vst.msk [vmem:[#allocation8] sm:$0x1] %vm140_vm4, %v139_v23 }
 0x110   :  { %v206_v24 = vpop.eup %205 }
 0x111   :  { %129 = vst.msk [vmem:[#allocation6] sm:$0xf] %vm121_vm2, %v206_v24 }
 0x112   :  { %262 = shalt.err (!%p259_p6)
}
 0x113   :  { %s263_s24 = scalar_lea.hbm %s399_s4, 64 }
 0x114   :  { %p264_p7 = scmp.ne.s32.totalorder %s399_s4, %s263_s24  ;;  %p267_p8 = scmp.lt.u32.totalorder %s263_s24, %s399_s4 }
 0x116   :  { %p269_p9 = pnand %p267_p8, %p264_p7 }
 0x118   :  { %272 = shalt.err (!%p269_p9)
}
 0x119   :  { %161 = dma.vmem_to_hbm [thread:$0]  %s159_s19, 64, %s399_s4, [#allocation7]  }
 0x11a   :  { %s273_s6 = scalar_lea.vmem %s169_s21, 16  ;;  %s277_s7 = scalar_lea.vmem %s169_s21, 32 }
 0x11b   :  { %p274_p10 = scmp.ne.s32.totalorder %s169_s21, %s273_s6  ;;  %p278_p11 = scmp.lt.s32.totalorder %s169_s21, %s169_s21 }
 0x11c   :  { %p279_p12 = scmp.lt.s32.totalorder %s277_s7, %s273_s6 }
 0x11e   :  { %p280_p13 = por %p279_p12, %p278_p11 }
 0x120   :  { %p281_p0 = pnand %p280_p13, %p274_p10 }
 0x122   :  { %284 = shalt.err (!%p281_p0)
}
 0x123   :  { %s285_s9 = scalar_lea.hbm %s400_s5, 16 }
 0x124   :  { %p286_p1 = scmp.ne.s32.totalorder %s400_s5, %s285_s9  ;;  %p289_p2 = scmp.lt.u32.totalorder %s285_s9, %s400_s5 }
 0x126   :  { %p291_p3 = pnand %p289_p2, %p286_p1 }
 0x128   :  { %294 = shalt.err (!%p291_p3)
}
 0x129   :  { %171 = dma.vmem_to_hbm [thread:$0]  %s169_s21, 16, %s400_s5, [#allocation7]  }
 0x12a   :  { %297 = dma.done.wait [#allocation4], 64  }
 0x12b   :  { %298 = vsyncadd [#allocation4], 4294967232 }
 0x12c   :  { %299 = dma.done.wait [#allocation7], 80  }
 0x12d   :  { %300 = vsyncadd [#allocation7], 4294967216 }
 0x12e   :  { %181 = vsyncpa [#allocation3], 1 }
 0x12f   :  { %182 = vsyncpa [#allocation4], 1 }
 0x130   :  { %183 = vsyncpa [#allocation7], 1 }

</bundles_post_ra>
